<compile_context>
chip_gen: v6e
topology: v6e:2x2x1
jax: 0.10.0
libtpu: 0.0.40
codegen_flags: <defaults>
</compile_context>

<pallas_src>
import jax
import jax.numpy as jnp
from jax import lax
from jax.experimental import pallas as pl
from jax.experimental.pallas import tpu as pltpu


def _round_up(x, n):
    return ((x + n - 1) // n) * n


def _q_net_kernel(x_ref, w1_ref, b1_ref, w2_ref, b2_ref, wq_ref, bq_ref, q_ref):
    # x tile: [tile_m, state_dim]; everything else resident in VMEM.
    x = x_ref[...]

    # fcs1 + ReLU : [tile_m, state_dim] @ [state_dim, 10] + [1, 10]
    s1 = jnp.dot(x, w1_ref[...], preferred_element_type=jnp.float32) + b1_ref[...]
    s1 = jnp.maximum(s1, 0.0)

    # fcs2 + ReLU : [tile_m, 10] @ [10, 20] + [1, 20]
    s2 = jnp.dot(s1, w2_ref[...], preferred_element_type=jnp.float32) + b2_ref[...]
    s2 = jnp.maximum(s2, 0.0)

    # Fused heads, lane-dense transposed output:
    #   wq [20, 2] contracted with s2 [tile_m, 20] on dim 20 -> (2, tile_m)
    q_t = lax.dot_general(
        wq_ref[...], s2,
        dimension_numbers=(((0,), (1,)), ((), ())),
        preferred_element_type=jnp.float32,
    )
    q_ref[...] = (q_t + bq_ref[...]).astype(q_ref.dtype)   # bias [2, 1] broadcasts


def simple_q_net_forward(state, params, *, tile_m=512):
    """state: [m, state_dim] float32. params: dict of weights/biases.

    Returns (q0, q1), each [m, 1] float32 (same semantics as the torch module).
    """
    m, state_dim = state.shape

    # Pick a batch tile: single tile if the batch fits, otherwise a multiple of
    # 128 so the lane-dense (2, tile_m) output blocks store unmasked.
    if m <= tile_m:
        tile_m = _round_up(m, 8)
    else:
        tile_m = max(128, (tile_m // 128) * 128)
    m_pad = _round_up(m, tile_m)
    if m_pad != m:
        state = jnp.pad(state, ((0, m_pad - m), (0, 0)))

    w1, b1 = params["w1"], params["b1"]
    w2, b2 = params["w2"], params["b2"]
    # Fuse the two scalar heads: [20, 2] weight, [2, 1] bias (column for the
    # transposed (2, tile_m) output layout).
    wq = jnp.concatenate([params["wq0"], params["wq1"]], axis=1)        # [20, 2]
    bq = jnp.concatenate([params["bq0"], params["bq1"]], axis=1).T      # [2, 1]

    grid = (m_pad // tile_m,)
    const = lambda a: pl.BlockSpec(a.shape, lambda i: (0,) * a.ndim)

    q_t = pl.pallas_call(
        _q_net_kernel,
        out_shape=jax.ShapeDtypeStruct((2, m_pad), jnp.float32),
        grid=grid,
        in_specs=[
            pl.BlockSpec((tile_m, state_dim), lambda i: (i, 0)),  # streamed batch tiles
            const(w1), const(b1), const(w2), const(b2),           # resident weights
            const(wq), const(bq),
        ],
        out_specs=pl.BlockSpec((2, tile_m), lambda i: (0, i)),     # lane-dense output
        compiler_params=pltpu.CompilerParams(
            dimension_semantics=("parallel",),
        ),
    )(state, w1, b1, w2, b2, wq, bq)

    q = q_t[:, :m].T                       # [m, 2]
    return q[:, 0:1], q[:, 1:2]


def init_params(key, state_dim):
    """Deterministic synthetic init (uniform, like torch's default fan-in bound)."""
    ks = jax.random.split(key, 8)

    def lin(kw, kb, fan_in, fan_out):
        bound = 1.0 / jnp.sqrt(fan_in)
        w = jax.random.uniform(kw, (fan_in, fan_out), jnp.float32, -bound, bound)
        b = jax.random.uniform(kb, (1, fan_out), jnp.float32, -bound, bound)
        return w, b

    w1, b1 = lin(ks[0], ks[1], state_dim, 10)
    w2, b2 = lin(ks[2], ks[3], 10, 20)
    wq0, bq0 = lin(ks[4], ks[5], 20, 1)
    wq1, bq1 = lin(ks[6], ks[7], 20, 1)
    return dict(w1=w1, b1=b1, w2=w2, b2=b2,
                wq0=wq0, bq0=bq0, wq1=wq1, bq1=bq1)


def _reference_forward(state, p):
    s1 = jnp.maximum(state @ p["w1"] + p["b1"], 0.0)
    s2 = jnp.maximum(s1 @ p["w2"] + p["b2"], 0.0)
    return s2 @ p["wq0"] + p["bq0"], s2 @ p["wq1"] + p["bq1"]


if __name__ == "__main__":
    key = jax.random.PRNGKey(0)
    k_param, k_small, k_big = jax.random.split(key, 3)

    state_dim = 32  # config.state_dim
    params = init_params(k_param, state_dim)

    # Small batch (single tile path), as in the original usage.
    m_small = 8
    state_small = jax.random.normal(k_small, (m_small, state_dim), jnp.float32)
    q0, q1 = simple_q_net_forward(state_small, params)
    jax.block_until_ready((q0, q1))
    r0, r1 = _reference_forward(state_small, params)
    assert q0.shape == (m_small, 1) and q1.shape == (m_small, 1)
    assert jnp.allclose(q0, r0, atol=1e-5) and jnp.allclose(q1, r1, atol=1e-5)

    # Larger, non-multiple-of-tile batch (exercises the tiled/pipelined grid
    # and padding path).
    m_big = 1000
    state_big = jax.random.normal(k_big, (m_big, state_dim), jnp.float32)
    Q0, Q1 = simple_q_net_forward(state_big, params, tile_m=512)
    jax.block_until_ready((Q0, Q1))
    R0, R1 = _reference_forward(state_big, params)
    assert Q0.shape == (m_big, 1) and Q1.shape == (m_big, 1)
    assert jnp.allclose(Q0, R0, atol=1e-5) and jnp.allclose(Q1, R1, atol=1e-5)

    print("KERNEL_OK")
</pallas_src>

<mosaic_0001>
module attributes {stable_mosaic.version = 11 : i64} {
  func.func @_q_net_kernel(%arg0: i32, %arg1: memref<8x32xf32, #tpu.memory_space<vmem>>, %arg2: memref<32x10xf32, #tpu.memory_space<vmem>>, %arg3: memref<1x10xf32, #tpu.memory_space<vmem>>, %arg4: memref<10x20xf32, #tpu.memory_space<vmem>>, %arg5: memref<1x20xf32, #tpu.memory_space<vmem>>, %arg6: memref<20x2xf32, #tpu.memory_space<vmem>>, %arg7: memref<2x1xf32, #tpu.memory_space<vmem>>, %arg8: memref<2x8xf32, #tpu.memory_space<vmem>>) attributes {dimension_semantics = [#tpu.dimension_semantics<parallel>], iteration_bounds = array<i64: 1>, scalar_prefetch = 0 : i64, scratch_operands = 0 : i64, tpu.core_type = #tpu.core_type<tc>, window_params = [{transform_indices = @transform_0, window_bounds = array<i64: 8, 32>}, {pipeline_mode = #tpu.pipeline_mode<synchronous>, transform_indices = @transform_1, window_bounds = array<i64: 32, 10>}, {pipeline_mode = #tpu.pipeline_mode<synchronous>, transform_indices = @transform_2, window_bounds = array<i64: 1, 10>}, {pipeline_mode = #tpu.pipeline_mode<synchronous>, transform_indices = @transform_3, window_bounds = array<i64: 10, 20>}, {pipeline_mode = #tpu.pipeline_mode<synchronous>, transform_indices = @transform_4, window_bounds = array<i64: 1, 20>}, {pipeline_mode = #tpu.pipeline_mode<synchronous>, transform_indices = @transform_5, window_bounds = array<i64: 20, 2>}, {pipeline_mode = #tpu.pipeline_mode<synchronous>, transform_indices = @transform_6, window_bounds = array<i64: 2, 1>}, {transform_indices = @transform_7, window_bounds = array<i64: 2, 8>}]} {
    %c0 = arith.constant 0 : index
    %c0_0 = arith.constant 0 : index
    %0 = vector.load %arg1[%c0, %c0_0] : memref<8x32xf32, #tpu.memory_space<vmem>>, vector<8x32xf32>
    %c0_1 = arith.constant 0 : index
    %c0_2 = arith.constant 0 : index
    %1 = vector.load %arg2[%c0_1, %c0_2] : memref<32x10xf32, #tpu.memory_space<vmem>>, vector<32x10xf32>
    %cst = arith.constant dense<0.000000e+00> : vector<8x10xf32>
    %2 = tpu.matmul %0, %1, %cst {dimension_numbers = #tpu.dot_dimension_numbers<[1], [0], [0], [1], [0, 0, 1, 1], [], []>} : vector<8x32xf32>, vector<32x10xf32>, vector<8x10xf32> -> vector<8x10xf32>
    %c0_3 = arith.constant 0 : index
    %c0_4 = arith.constant 0 : index
    %3 = vector.load %arg3[%c0_3, %c0_4] : memref<1x10xf32, #tpu.memory_space<vmem>>, vector<1x10xf32>
    %4 = vector.broadcast %3 : vector<1x10xf32> to vector<8x10xf32>
    %5 = arith.addf %2, %4 : vector<8x10xf32>
    %cst_5 = arith.constant 0.000000e+00 : f32
    %6 = vector.broadcast %cst_5 : f32 to vector<8x10xf32>
    %7 = arith.maximumf %5, %6 : vector<8x10xf32>
    %c0_6 = arith.constant 0 : index
    %c0_7 = arith.constant 0 : index
    %8 = vector.load %arg4[%c0_6, %c0_7] : memref<10x20xf32, #tpu.memory_space<vmem>>, vector<10x20xf32>
    %cst_8 = arith.constant dense<0.000000e+00> : vector<8x20xf32>
    %9 = tpu.matmul %7, %8, %cst_8 {dimension_numbers = #tpu.dot_dimension_numbers<[1], [0], [0], [1], [0, 0, 1, 1], [], []>} : vector<8x10xf32>, vector<10x20xf32>, vector<8x20xf32> -> vector<8x20xf32>
    %c0_9 = arith.constant 0 : index
    %c0_10 = arith.constant 0 : index
    %10 = vector.load %arg5[%c0_9, %c0_10] : memref<1x20xf32, #tpu.memory_space<vmem>>, vector<1x20xf32>
    %11 = vector.broadcast %10 : vector<1x20xf32> to vector<8x20xf32>
    %12 = arith.addf %9, %11 : vector<8x20xf32>
    %cst_11 = arith.constant 0.000000e+00 : f32
    %13 = vector.broadcast %cst_11 : f32 to vector<8x20xf32>
    %14 = arith.maximumf %12, %13 : vector<8x20xf32>
    %c0_12 = arith.constant 0 : index
    %c0_13 = arith.constant 0 : index
    %15 = vector.load %arg6[%c0_12, %c0_13] : memref<20x2xf32, #tpu.memory_space<vmem>>, vector<20x2xf32>
    %cst_14 = arith.constant dense<0.000000e+00> : vector<2x8xf32>
    %16 = tpu.matmul %15, %14, %cst_14 {dimension_numbers = #tpu.dot_dimension_numbers<[0], [1], [1], [0], [0, 1, 1, 0], [], []>} : vector<20x2xf32>, vector<8x20xf32>, vector<2x8xf32> -> vector<2x8xf32>
    %c0_15 = arith.constant 0 : index
    %c0_16 = arith.constant 0 : index
    %17 = vector.load %arg7[%c0_15, %c0_16] : memref<2x1xf32, #tpu.memory_space<vmem>>, vector<2x1xf32>
    %18 = vector.broadcast %17 : vector<2x1xf32> to vector<2x8xf32>
    %19 = arith.addf %16, %18 : vector<2x8xf32>
    %c0_17 = arith.constant 0 : index
    %c0_18 = arith.constant 0 : index
    %20 = vector.load %arg8[%c0_17, %c0_18] : memref<2x8xf32, #tpu.memory_space<vmem>>, vector<2x8xf32>
    tpu.vector_store %arg8[%c0_17, %c0_18], %19 {strides = array<i32>} : memref<2x8xf32, #tpu.memory_space<vmem>>, vector<2x8xf32>,
    return
  }
  func.func @transform_0(%arg0: i32) -> (i32, i32) {
    %c0_i32 = arith.constant 0 : i32
    %c0_i32_0 = arith.constant 0 : i32
    return %arg0, %c0_i32 : i32, i32
  }
  func.func @transform_1(%arg0: i32) -> (i32, i32) {
    %c0_i32 = arith.constant 0 : i32
    %c0_i32_0 = arith.constant 0 : i32
    %c0_i32_1 = arith.constant 0 : i32
    return %c0_i32, %c0_i32_0 : i32, i32
  }
  func.func @transform_2(%arg0: i32) -> (i32, i32) {
    %c0_i32 = arith.constant 0 : i32
    %c0_i32_0 = arith.constant 0 : i32
    %c0_i32_1 = arith.constant 0 : i32
    return %c0_i32, %c0_i32_0 : i32, i32
  }
  func.func @transform_3(%arg0: i32) -> (i32, i32) {
    %c0_i32 = arith.constant 0 : i32
    %c0_i32_0 = arith.constant 0 : i32
    %c0_i32_1 = arith.constant 0 : i32
    return %c0_i32, %c0_i32_0 : i32, i32
  }
  func.func @transform_4(%arg0: i32) -> (i32, i32) {
    %c0_i32 = arith.constant 0 : i32
    %c0_i32_0 = arith.constant 0 : i32
    %c0_i32_1 = arith.constant 0 : i32
    return %c0_i32, %c0_i32_0 : i32, i32
  }
  func.func @transform_5(%arg0: i32) -> (i32, i32) {
    %c0_i32 = arith.constant 0 : i32
    %c0_i32_0 = arith.constant 0 : i32
    %c0_i32_1 = arith.constant 0 : i32
    return %c0_i32, %c0_i32_0 : i32, i32
  }
  func.func @transform_6(%arg0: i32) -> (i32, i32) {
    %c0_i32 = arith.constant 0 : i32
    %c0_i32_0 = arith.constant 0 : i32
    %c0_i32_1 = arith.constant 0 : i32
    return %c0_i32, %c0_i32_0 : i32, i32
  }
  func.func @transform_7(%arg0: i32) -> (i32, i32) {
    %c0_i32 = arith.constant 0 : i32
    %c0_i32_0 = arith.constant 0 : i32
    return %c0_i32, %arg0 : i32, i32
  }
}

</mosaic_0001>

<bundles_post_ra>
// kernel: tpu_custom_call.1
= control target key start
LH: loop header
LB: loop body
LE: loop exit
PB: predicated region body
PF: predicated region fallthrough
CT: control target
= control target key end

     0   :  { %v404_v1 = vmov 0.0   ;;  %vm405_vm0 = vmmov 0   ;;  %s493_s0 = inlined_call_operand.vmem [shape: f32[8,32], index: 0, kind: input, shape index: {}]   ;;  %s494_s1 = inlined_call_operand.vmem [shape: f32[32,10], index: 1, kind: input, shape index: {}]   ;;  %s495_s2 = inlined_call_operand.vmem [shape: f32[1,10], index: 2, kind: input, shape index: {}]   ;;  %s496_s3 = inlined_call_operand.vmem [shape: f32[10,20], index: 3, kind: input, shape index: {}]   ;;  %s497_s4 = inlined_call_operand.vmem [shape: f32[1,20], index: 4, kind: input, shape index: {}]   ;;  %s498_s5 = inlined_call_operand.vmem [shape: f32[20,2], index: 5, kind: input, shape index: {}]   ;;  %s499_s6 = inlined_call_operand.vmem [shape: f32[2,1], index: 6, kind: input, shape index: {}]   ;;  %s500_s7 = inlined_call_operand.hbm [shape: f32[2,8], index: 7, kind: output, shape index: {}]  }
   0x1   :  { %v31_v0 = vld [vmem:[%s494_s1 + $0x18] sm:$0xff]  ;;  %353 = vmatprep.subr.mxu0 %v404_v1  ;;  %v30_v2 = vld [vmem:[%s494_s1 + $0x10] sm:$0xff]  ;;  %361 = vmatprep.mubr.msk.f32.mxu0 %vm405_vm0, %v404_v1 }
   0x2   :  { %354 = vmatpush3.msra.mxu0 %v31_v0  ;;  %364 = vmatprep.subr.mxu1 %v404_v1 }
   0x3   :  { %12 = vsyncpa [#allocation3], 0  ;;  %355 = vmatprep.subr.mxu0 %v404_v1  ;;  %v29_v3 = vld [vmem:[%s494_s1 + $0x8] sm:$0xff]  ;;  %368 = vmatprep.mubr.msk.f32.mxu1 %vm405_vm0, %v404_v1  ;;  %v28_v4 = vld [vmem:[%s494_s1] sm:$0xff]  ;;  %vm39_vm1 = vcmask 261120   ;;  %vm127_vm2 = vcmask 1041408  }
   0x4   :  { %356 = vmatpush3.msra.mxu0 %v30_v2  ;;  %v27_v5 = vld [vmem:[%s493_s0] sm:$0xff]  ;;  %v115_v6 = vld [vmem:[%s496_s3 + $0x8] sm:$0x3]  ;;  %v204_v10 = vld [vmem:[%s498_s5 + $0x10] sm:$0xf]  ;;  %vm123_vm3 = vcmask 80896  }
   0x5   :  { %357 = vmatprep.subr.mxu0 %v404_v1  ;;  %365 = vmatpush3.msk.msra.mxu1 %vm127_vm2, %v115_v6  ;;  %v114_v7 = vld [vmem:[%s496_s3] sm:$0xff]  ;;  %v203_v9 = vld [vmem:[%s498_s5 + $0x8] sm:$0xff]  ;;  %v406_v17 = vmov 0   ;;  %vm243_vm4 = vcmask 162816   ;;  %vm320_vm5 = vcmask 58368  }
   0x6   :  { %358 = vmatpush3.msra.mxu0 %v29_v3  ;;  %366 = vmatprep.subr.mxu1 %v404_v1  ;;  %v202_v8 = vld [vmem:[%s498_s5] sm:$0xff] }
   0x7   :  { %359 = vmatprep.subr.mxu0 %v404_v1  ;;  %367 = vmatpush3.msra.mxu1 %v114_v7  ;;  %v336_v11 = vld [vmem:[%s495_s2] ss:$0 sm:$0xff]  ;;  %s407_s2 = smov [#allocation2]  }
   0x8   :  { %360 = vmatpush3.msra.mxu0 %v28_v4  ;;  %371 = vmatprep.subr.mxu1 %v404_v1  ;;  %v205_v16 = vld [vmem:[%s499_s6] sm:$0x3]  ;;  %s328_s23 = sshll.u32 %s407_s2, 4  ;;  %s329_s23 = int_to_ptr.vmem [resolvable:$true] %s328_s23 }
   0x9   :  { %362 = vmatmul.mubr.msk.f32.vlgmr.msra.gmra.mxu0 %vm39_vm1, %v27_v5  ;;  %211 = vxpose.xlu0.b32.start [1/3] (short) (narrow) %v202_v8, 8  ;;  %v338_v18 = vld [vmem:[%s497_s4] ss:$0 sm:$0xff]  ;;  %s382_s6 = scalar_lea.vmem %s329_s23, 32  ;;  %p387_p1 = scmp.lt.s32.totalorder %s329_s23, %s329_s23 }
   0xa   :  { %380 = vset.pattern.permute.xlu1 %v406_v17  ;;  %p383_p0 = scmp.ne.s32.totalorder %s329_s23, %s382_s6  ;;  %p388_p2 = scmp.lt.s32.totalorder %s382_s6, %s382_s6 }
   0xb   :  { %208 = vperm.xlu1 %380, %v205_v16  }
   0xc   :  { %p389_p3 = por %p388_p2, %p387_p1 }
   0xd   :  { %212 = vxpose.xlu0.b32.cont [2/3] (short) (narrow) %v203_v9, 8 }
   0xe   :  { %p390_p4 = pnand %p389_p3, %p383_p0 }
  0x11   :  { %213 = vxpose.xlu0.b32.end [3/3] (short) (narrow) %v204_v10, 8 }
  0x3a   :  { %381 = vset.pattern.permute.xlu0 %v406_v17 }
  0x85   :  { %v227_v23 = vpop.trf.xlu0 }
  0x86   :  { %v209_v24 = vpop.permute.xlu1 %208 }
  0xc9   :  { %v109_v12 = vpop.f32.mrf.mxu0 }
  0xca   :  { %v110_v13 = vadd.f32 %v336_v11, %v109_v12 }
  0xcb   :  { %v363_v14 = vpop.f32.mrf.mxu0 }
  0xcc   :  { %v113_v15 = vmax.f32 %v110_v13, 0.0 }
  0xce   :  { %369 = vmatmul.mubr.msk.f32.vlgmr.msra.gmra.mxu1 %vm123_vm3, %v113_v15 }
  0xcf   :  { %373 = vmatprep.mubr.msk.f32.mxu1 %vm405_vm0, %v404_v1 }
 0x18e   :  { %v197_v19 = vpop.f32.mrf.mxu1 }
 0x18f   :  { %v198_v20 = vadd.f32 %v338_v18, %v197_v19 }
 0x190   :  { %v370_v21 = vpop.f32.mrf.mxu1 }
 0x191   :  { %v201_v22 = vmax.f32 %v198_v20, 0.0 }
 0x193   :  { %372 = vmatpush3.xpose.msk.msra.mxu1 %vm243_vm4, %v201_v22 }
 0x196   :  { %374 = vmatmul.mubr.msk.f32.vlgmr.msra.gmra.mxu1 %vm243_vm4, %v227_v23 }
 0x256   :  { %v316_v25 = vpop.f32.mrf.mxu1 }
 0x257   :  { %v317_v26 = vadd.f32 %v316_v25, %v209_v24 }
 0x258   :  { %v375_v27 = vpop.f32.mrf.mxu1 }
 0x259   :  { %321 = vst.msk [vmem:[#allocation2] sm:$0x3] %vm320_vm5, %v317_v26 }
 0x25a   :  { %393 = shalt.err (!%p390_p4)
}
 0x25b   :  { %331 = dma.vmem_to_hbm [thread:$0]  %s329_s23, 32, %s500_s7, [#allocation3]  }
 0x25c   :  { %402 = dma.done.wait [#allocation3], 32  }
 0x25d   :  { %403 = vsyncadd [#allocation3], 4294967264 }
 0x25e   :  { %335 = vsyncpa [#allocation3], 1 }

</bundles_post_ra>
